<compile_context>
chip_gen: v7x
topology: tpu7x:2x2x1
jax: 0.10.0
libtpu: 0.0.40
codegen_flags: <defaults>
</compile_context>

<pallas_src>
import functools
import math

import jax
import jax.numpy as jnp
from jax import lax
from jax.experimental import pallas as pl
from jax.experimental.pallas import tpu as pltpu


def _round_up(n: int, m: int) -> int:
    return ((n + m - 1) // m) * m


# ---------------------------------------------------------------------------
# Shared in-kernel math
# ---------------------------------------------------------------------------
def _masks(shape, hidden_size, output_size):
    col = lax.broadcasted_iota(jnp.int32, shape, 1)
    is_hidden = col < hidden_size
    is_logit = jnp.logical_and(col >= hidden_size, col < hidden_size + output_size)
    return is_hidden, is_logit


def _slab_from_fused(fused, is_hidden, is_logit):
    """fused (Bp, Np) -> (out slab, hidden lanes).

    Out slab: cols [0:H] = new hidden, [H:H+O] = log-softmax output, rest = 0.
    Masked log-softmax over the logit lanes only (exp(-inf) == 0 elsewhere).
    """
    logits = jnp.where(is_logit, fused, -jnp.inf)
    m = jnp.max(logits, axis=1, keepdims=True)
    lse = jnp.log(jnp.sum(jnp.exp(logits - m), axis=1, keepdims=True))
    logp = fused - m - lse
    hidden_lanes = jnp.where(is_hidden, fused, 0.0)
    return jnp.where(is_logit, logp, hidden_lanes), hidden_lanes


# ---------------------------------------------------------------------------
# Single-step cell (matches RNN.forward exactly)
# ---------------------------------------------------------------------------
def rnn_cell_kernel(x_ref, h_ref, wx_ref, wh_ref, b_ref, out_ref, *,
                    hidden_size, output_size):
    fused = (jnp.dot(x_ref[...], wx_ref[...], preferred_element_type=jnp.float32)
             + jnp.dot(h_ref[...], wh_ref[...], preferred_element_type=jnp.float32)
             + b_ref[...])
    is_hidden, is_logit = _masks(fused.shape, hidden_size, output_size)
    slab, _ = _slab_from_fused(fused, is_hidden, is_logit)
    out_ref[...] = slab


@functools.partial(jax.jit, static_argnames=("hidden_size", "output_size"))
def rnn_forward(x, hidden, wx, wh, b, *, hidden_size, output_size):
    """Pallas equivalent of RNN.forward(input, hidden) -> (output, hidden)."""
    batch, _ = x.shape
    n_pad = wx.shape[1]
    h_pad = wh.shape[0]
    b_pad = _round_up(max(batch, 8), 8)                 # full sublane groups

    xp = jnp.pad(x.astype(jnp.float32), ((0, b_pad - batch), (0, 0)))
    hp = jnp.pad(hidden.astype(jnp.float32),
                 ((0, b_pad - batch), (0, h_pad - hidden_size)))

    vmem = pl.BlockSpec(memory_space=pltpu.MemorySpace.VMEM)
    slab = pl.pallas_call(
        functools.partial(rnn_cell_kernel,
                          hidden_size=hidden_size, output_size=output_size),
        out_shape=jax.ShapeDtypeStruct((b_pad, n_pad), jnp.float32),
        in_specs=[vmem, vmem, vmem, vmem, vmem],
        out_specs=vmem,
    )(xp, hp, wx, wh, b)

    output = slab[:batch, hidden_size:hidden_size + output_size]
    new_hidden = slab[:batch, :hidden_size]
    return output, new_hidden


# ---------------------------------------------------------------------------
# Fused multi-step recurrence: one pallas_call, time-chunked grid,
# hidden carried in the (VMEM-resident) final-hidden output ref.
# ---------------------------------------------------------------------------
def rnn_seq_kernel(pre_ref, h0_ref, wh_ref, out_ref, hcarry_ref, *,
                   hidden_size, output_size, seq_len, chunk):
    t = pl.program_id(0)

    @pl.when(t == 0)
    def _():
        hcarry_ref[...] = h0_ref[...]

    b_pad, n_pad = out_ref.shape[1], out_ref.shape[2]
    h_pad = hcarry_ref.shape[1]

    # Hoisted: build masks once per chunk, not once per timestep.
    is_hidden, is_logit = _masks((b_pad, n_pad), hidden_size, output_size)

    wh = wh_ref[...]                     # (Hp, Np), VMEM-resident across the grid

    def step(i, h):
        # Serial path: only the recurrent matmul.  x @ Wx + b was hoisted to the
        # wrapper and arrives precomputed in pre_ref.
        fused = pre_ref[i] + jnp.dot(h, wh, preferred_element_type=jnp.float32)
        slab, hidden_lanes = _slab_from_fused(fused, is_hidden, is_logit)
        out_ref[i] = slab

        # New carry: hidden lanes only, explicitly zero-masked beyond H (does
        # not rely on zero-padded Wh rows).  Static, lane-aligned slice.
        h_new = hidden_lanes[:, :h_pad]
        if seq_len % chunk == 0:
            return h_new
        # Don't advance the carry on padded (t*chunk + i >= T) timesteps.
        valid = (t * chunk + i) < seq_len
        return jnp.where(valid, h_new, h)

    hcarry_ref[...] = lax.fori_loop(0, chunk, step, hcarry_ref[...], unroll=True)


@functools.partial(jax.jit,
                   static_argnames=("hidden_size", "output_size", "chunk"))
def rnn_forward_sequence(xs, hidden0, wx, wh, b, *,
                         hidden_size, output_size, chunk=16):
    """Run T recurrent steps with one pallas_call.

    xs: (T, B, I). Returns (outputs (T, B, O), final_hidden (B, H)).
    """
    seq_len, batch, input_size = xs.shape
    n_pad = wx.shape[1]
    h_pad = wh.shape[0]
    b_pad = _round_up(max(batch, 8), 8)

    chunk = max(1, min(chunk, seq_len))
    num_chunks = pl.cdiv(seq_len, chunk)
    t_pad = num_chunks * chunk

    # Hoisted non-recurrent term: one well-shaped (T*B, I) x (I, Np) matmul off
    # the serial dependence chain.
    pre = (jnp.dot(xs.reshape(seq_len * batch, input_size).astype(jnp.float32),
                   wx, precision=lax.Precision.HIGHEST)
           + b).reshape(seq_len, batch, n_pad)
    pre = jnp.pad(pre, ((0, t_pad - seq_len), (0, b_pad - batch), (0, 0)))

    h0 = jnp.pad(hidden0.astype(jnp.float32),
                 ((0, b_pad - batch), (0, h_pad - hidden_size)))

    out, h_last = pl.pallas_call(
        functools.partial(rnn_seq_kernel,
                          hidden_size=hidden_size, output_size=output_size,
                          seq_len=seq_len, chunk=chunk),
        grid=(num_chunks,),
        in_specs=[
            pl.BlockSpec((chunk, b_pad, n_pad), lambda t: (t, 0, 0)),
            pl.BlockSpec((b_pad, h_pad), lambda t: (0, 0)),
            pl.BlockSpec((h_pad, n_pad), lambda t: (0, 0)),
        ],
        out_specs=(
            pl.BlockSpec((chunk, b_pad, n_pad), lambda t: (t, 0, 0)),
            pl.BlockSpec((b_pad, h_pad), lambda t: (0, 0)),   # resident carry
        ),
        out_shape=(
            jax.ShapeDtypeStruct((t_pad, b_pad, n_pad), jnp.float32),
            jax.ShapeDtypeStruct((b_pad, h_pad), jnp.float32),
        ),
        compiler_params=pltpu.CompilerParams(
            dimension_semantics=("arbitrary",)),   # time axis is serial
    )(pre, h0, wh)

    outputs = out[:seq_len, :batch, hidden_size:hidden_size + output_size]
    final_hidden = h_last[:batch, :hidden_size]
    return outputs, final_hidden


# ---------------------------------------------------------------------------
# One-time parameter packing (do at load time, outside the hot path)
# ---------------------------------------------------------------------------
def pack_rnn_params(w_h, b_h, w_o, b_o, input_size):
    """Fuse the two Linear layers, pre-transpose to (K, N), zero-pad to a
    lane-dense 128-wide N.  Returns (wx (I, Np), wh (Hp, Np), b (1, Np))."""
    hidden_size = w_h.shape[0]
    output_size = w_o.shape[0]
    n = hidden_size + output_size
    n_pad = _round_up(n, 128)
    h_pad = _round_up(hidden_size, 128)

    w = jnp.concatenate([w_h, w_o], axis=0).T.astype(jnp.float32)      # (I+H, H+O)
    w = jnp.pad(w, ((0, 0), (0, n_pad - n)))                           # (I+H, Np)
    wx = w[:input_size]                                                # (I, Np)
    wh = jnp.pad(w[input_size:], ((0, h_pad - hidden_size), (0, 0)))   # (Hp, Np)
    b = jnp.pad(jnp.concatenate([b_h, b_o]).astype(jnp.float32),
                (0, n_pad - n)).reshape(1, n_pad)
    return wx, wh, b


def init_linear_params(key, out_features, in_features):
    """Deterministic PyTorch-style nn.Linear init: U(-1/sqrt(fan_in), +)."""
    k_w, k_b = jax.random.split(key)
    bound = 1.0 / math.sqrt(in_features)
    w = jax.random.uniform(k_w, (out_features, in_features),
                           minval=-bound, maxval=bound, dtype=jnp.float32)
    b = jax.random.uniform(k_b, (out_features,),
                           minval=-bound, maxval=bound, dtype=jnp.float32)
    return w, b


if __name__ == "__main__":
    batch_size = 2
    input_size = 16
    hidden_size = 32
    output_size = 8
    seq_len = 8

    key = jax.random.PRNGKey(0)
    k_x, k_seq, k_i2h, k_i2o = jax.random.split(key, 4)

    x = jax.random.normal(k_x, (batch_size, input_size), dtype=jnp.float32)
    hidden0 = jnp.zeros((batch_size, hidden_size), dtype=jnp.float32)  # RNN.initHidden

    w_h, b_h = init_linear_params(k_i2h, hidden_size, input_size + hidden_size)
    w_o, b_o = init_linear_params(k_i2o, output_size, input_size + hidden_size)

    # Pack once (hoisted out of the steady-state call path).
    wx, wh, b = pack_rnn_params(w_h, b_h, w_o, b_o, input_size)

    # --- single step (exact RNN.forward semantics) ---
    out, new_hidden = rnn_forward(x, hidden0, wx, wh, b,
                                  hidden_size=hidden_size, output_size=output_size)
    jax.block_until_ready((out, new_hidden))

    combined = jnp.concatenate([x, hidden0], axis=1)
    ref_hidden = combined @ w_h.T + b_h
    ref_out = jax.nn.log_softmax(combined @ w_o.T + b_o, axis=1)
    assert jnp.allclose(out, ref_out, atol=1e-5, rtol=1e-5)
    assert jnp.allclose(new_hidden, ref_hidden, atol=1e-5, rtol=1e-5)

    # --- fused sequence (T steps, one pallas_call, time-chunked grid) ---
    xs = jax.random.normal(k_seq, (seq_len, batch_size, input_size), dtype=jnp.float32)
    outs, h_last = rnn_forward_sequence(xs, hidden0, wx, wh, b,
                                        hidden_size=hidden_size,
                                        output_size=output_size, chunk=8)
    jax.block_until_ready((outs, h_last))

    h_ref = hidden0
    ref_outs = []
    for t in range(seq_len):
        comb = jnp.concatenate([xs[t], h_ref], axis=1)
        new_h = comb @ w_h.T + b_h
        ref_outs.append(jax.nn.log_softmax(comb @ w_o.T + b_o, axis=1))
        h_ref = new_h
    ref_outs = jnp.stack(ref_outs)
    assert jnp.allclose(outs, ref_outs, atol=1e-4, rtol=1e-4)
    assert jnp.allclose(h_last, h_ref, atol=1e-4, rtol=1e-4)

    print("KERNEL_OK")
</pallas_src>

<mosaic_0001>
module attributes {stable_mosaic.version = 11 : i64} {
  func.func @rnn_cell_kernel(%arg0: memref<8x16xf32, #tpu.memory_space<vmem>>, %arg1: memref<8x128xf32, #tpu.memory_space<vmem>>, %arg2: memref<16x128xf32, #tpu.memory_space<vmem>>, %arg3: memref<128x128xf32, #tpu.memory_space<vmem>>, %arg4: memref<1x128xf32, #tpu.memory_space<vmem>>, %arg5: memref<8x128xf32, #tpu.memory_space<vmem>>) attributes {dimension_semantics = [], scalar_prefetch = 0 : i64, scratch_operands = 0 : i64, tpu.core_type = #tpu.core_type<tc>} {
    %c0 = arith.constant 0 : index
    %c0_0 = arith.constant 0 : index
    %0 = vector.load %arg0[%c0, %c0_0] : memref<8x16xf32, #tpu.memory_space<vmem>>, vector<8x16xf32>
    %c0_1 = arith.constant 0 : index
    %c0_2 = arith.constant 0 : index
    %1 = vector.load %arg2[%c0_1, %c0_2] : memref<16x128xf32, #tpu.memory_space<vmem>>, vector<16x128xf32>
    %cst = arith.constant dense<0.000000e+00> : vector<8x128xf32>
    %2 = tpu.matmul %0, %1, %cst {dimension_numbers = #tpu.dot_dimension_numbers<[1], [0], [0], [1], [0, 0, 1, 1], [], []>} : vector<8x16xf32>, vector<16x128xf32>, vector<8x128xf32> -> vector<8x128xf32>
    %c0_3 = arith.constant 0 : index
    %c0_4 = arith.constant 0 : index
    %3 = vector.load %arg1[%c0_3, %c0_4] : memref<8x128xf32, #tpu.memory_space<vmem>>, vector<8x128xf32>
    %c0_5 = arith.constant 0 : index
    %c0_6 = arith.constant 0 : index
    %4 = vector.load %arg3[%c0_5, %c0_6] : memref<128x128xf32, #tpu.memory_space<vmem>>, vector<128x128xf32>
    %cst_7 = arith.constant dense<0.000000e+00> : vector<8x128xf32>
    %5 = tpu.matmul %3, %4, %cst_7 {dimension_numbers = #tpu.dot_dimension_numbers<[1], [0], [0], [1], [0, 0, 1, 1], [], []>} : vector<8x128xf32>, vector<128x128xf32>, vector<8x128xf32> -> vector<8x128xf32>
    %6 = arith.addf %2, %5 : vector<8x128xf32>
    %c0_8 = arith.constant 0 : index
    %c0_9 = arith.constant 0 : index
    %7 = vector.load %arg4[%c0_8, %c0_9] : memref<1x128xf32, #tpu.memory_space<vmem>>, vector<1x128xf32>
    %8 = vector.broadcast %7 : vector<1x128xf32> to vector<8x128xf32>
    %9 = arith.addf %6, %8 : vector<8x128xf32>
    %10 = tpu.iota {dimensions = array<i32: 1>} : vector<8x128xi32>
    %c32_i32 = arith.constant 32 : i32
    %11 = vector.broadcast %c32_i32 : i32 to vector<8x128xi32>
    %12 = arith.cmpi slt, %10, %11 : vector<8x128xi32>
    %c32_i32_10 = arith.constant 32 : i32
    %13 = vector.broadcast %c32_i32_10 : i32 to vector<8x128xi32>
    %14 = arith.cmpi sge, %10, %13 : vector<8x128xi32>
    %c40_i32 = arith.constant 40 : i32
    %15 = vector.broadcast %c40_i32 : i32 to vector<8x128xi32>
    %16 = arith.cmpi slt, %10, %15 : vector<8x128xi32>
    %17 = arith.andi %14, %16 : vector<8x128xi1>
    %cst_11 = arith.constant 0xFF800000 : f32
    %18 = vector.broadcast %cst_11 : f32 to vector<8x128xf32>
    %19 = arith.select %17, %9, %18 : vector<8x128xi1>, vector<8x128xf32>
    %cst_12 = arith.constant dense<0xFF800000> : vector<8xf32>
    %20 = vector.multi_reduction <maximumf>, %19, %cst_12 [1] : vector<8x128xf32> to vector<8xf32>
    %21 = vector.shape_cast %20 : vector<8xf32> to vector<8x1xf32>
    %22 = vector.broadcast %21 : vector<8x1xf32> to vector<8x128xf32>
    %23 = arith.subf %19, %22 : vector<8x128xf32>
    %24 = math.exp %23 : vector<8x128xf32>
    %cst_13 = arith.constant dense<0.000000e+00> : vector<8xf32>
    %25 = vector.multi_reduction <add>, %24, %cst_13 [1] : vector<8x128xf32> to vector<8xf32>
    %26 = vector.shape_cast %25 : vector<8xf32> to vector<8x1xf32>
    %27 = math.log %26 : vector<8x1xf32>
    %28 = vector.broadcast %21 : vector<8x1xf32> to vector<8x128xf32>
    %29 = arith.subf %9, %28 : vector<8x128xf32>
    %30 = vector.broadcast %27 : vector<8x1xf32> to vector<8x128xf32>
    %31 = arith.subf %29, %30 : vector<8x128xf32>
    %cst_14 = arith.constant 0.000000e+00 : f32
    %32 = vector.broadcast %cst_14 : f32 to vector<8x128xf32>
    %33 = arith.select %12, %9, %32 : vector<8x128xi1>, vector<8x128xf32>
    %34 = arith.select %17, %31, %33 : vector<8x128xi1>, vector<8x128xf32>
    %c0_15 = arith.constant 0 : index
    %c0_16 = arith.constant 0 : index
    %35 = vector.load %arg5[%c0_15, %c0_16] : memref<8x128xf32, #tpu.memory_space<vmem>>, vector<8x128xf32>
    tpu.vector_store %arg5[%c0_15, %c0_16], %34 {strides = array<i32>} : memref<8x128xf32, #tpu.memory_space<vmem>>, vector<8x128xf32>,
    return
  }
}

</mosaic_0001>

<bundles_post_ra>
// kernel: rnn_forward.1
= control target key start
LH: loop header
LB: loop body
LE: loop exit
PB: predicated region body
PF: predicated region fallthrough
CT: control target
= control target key end

     0   :  { %10 = vsyncpa [#allocation3], 0  ;;  %s357_s18 = smov [#allocation2]   ;;  %s431_s0 = inlined_call_operand.vmem [shape: f32[8,16], index: 0, kind: input, shape index: {}]   ;;  %s432_s1 = inlined_call_operand.vmem [shape: f32[8,128], index: 1, kind: input, shape index: {}]   ;;  %s433_s2 = inlined_call_operand.vmem [shape: f32[16,128], index: 2, kind: input, shape index: {}]   ;;  %s434_s3 = inlined_call_operand.hbm [shape: f32[128,128], index: 3, kind: input, shape index: {}]   ;;  %s435_s4 = inlined_call_operand.vmem [shape: f32[1,128], index: 4, kind: input, shape index: {}]   ;;  %s436_s5 = inlined_call_operand.vmem [shape: f32[8,128], index: 5, kind: output, shape index: {}]  }
   0x1   :  { %s22_s19 = sshll.u32 %s357_s18, 4  ;;  %s333_s22 = scalar_lea.hbm %s434_s3, 2048  ;;  %s23_s19 = int_to_ptr.vmem [resolvable:$true] %s22_s19 }
   0x2   :  { %p334_p0 = scmp.ne.s32.totalorder %s434_s3, %s333_s22  ;;  %p337_p1 = scmp.lt.u32.totalorder %s333_s22, %s434_s3 }
   0x4   :  { %p339_p2 = pnand %p337_p1, %p334_p0 }
   0x6   :  { %342 = shalt.err (!%p339_p2)
}
   0x7   :  { %s343_s27 = scalar_lea.vmem %s23_s19, 2048  ;;  %p348_p4 = scmp.lt.s32.totalorder %s23_s19, %s23_s19 }
   0x8   :  { %p344_p3 = scmp.ne.s32.totalorder %s23_s19, %s343_s27  ;;  %p349_p5 = scmp.lt.s32.totalorder %s343_s27, %s343_s27 }
   0xa   :  { %p350_p6 = por %p349_p5, %p348_p4 }
   0xc   :  { %p351_p7 = pnand %p350_p6, %p344_p3 }
   0xe   :  { %354 = shalt.err (!%p351_p7)
}
   0xf   :  { %s358_s28 = smov 128   ;;  %s359_s29 = smov 8  }
  0x10   :  { %28 = dma.hbm_to_vmem [thread:$0]  %s434_s3, 2048, %s23_s19, [#allocation3], %s358_s28, %s358_s28, %s359_s29  }
  0x11   :  { %355 = dma.done.wait [#allocation3], 2048  }
  0x12   :  { %356 = vsyncadd [#allocation3], 4294965248  ;;  %v360_v0 = vmov 0.0|0.0   ;;  %vm361_vm0 = vmmov 0   ;;  %v362_v1 = vmov 0.0   ;;  %v38_v2 = vld [vmem:[#allocation2] sm:$0xff]  ;;  %v206_v33 = vlaneseq }
  0x13   :  { %296 = vmatprep.subr.bf16.mxu0 %v360_v0  ;;  %320 = vmatprep.subr.bf16.mxu1 %v360_v0  ;;  %v39_v3 = vld [vmem:[#allocation2 + $0x8] sm:$0xff]  ;;  %v40_v4 = vld [vmem:[#allocation2 + $0x10] sm:$0xff]  ;;  %v41_v6 = vld [vmem:[#allocation2 + $0x18] sm:$0xff]  ;;  %vm124_vm1 = vcmask 130048  }
  0x14   :  { %293 = vmatprep.mubr.msk.f32.mxu1 %vm361_vm0, %v362_v1  ;;  %286 = vmatprep.mubr.msk.f32.mxu0 %vm361_vm0, %v362_v1  ;;  %v297_v5 = vpack.c.bf16 %v39_v3, %v38_v2  ;;  %v300_v7 = vpack.c.bf16 %v41_v6, %v40_v4  ;;  %v42_v8 = vld [vmem:[#allocation2 + $0x20] sm:$0xff]  ;;  %v43_v9 = vld [vmem:[#allocation2 + $0x28] sm:$0xff]  ;;  %v44_v14 = vld [vmem:[#allocation2 + $0x30] sm:$0xff]  ;;  %v207_v34 = vand.u32 127, %v206_v33 }
  0x15   :  { %v35_v10 = vld [vmem:[%s433_s2] sm:$0xff]  ;;  %v36_v11 = vld [vmem:[%s433_s2 + $0x8] sm:$0xff]  ;;  %v303_v13 = vpack.c.bf16 %v43_v9, %v42_v8  ;;  %v45_v15 = vld [vmem:[#allocation2 + $0x38] sm:$0xff] }
  0x16   :  { %298 = vmatpush3.bf16.msra.mxu0 %v297_v5  ;;  %v321_v12 = vpack.c.bf16 %v36_v11, %v35_v10  ;;  %v34_v16 = vld [vmem:[%s431_s0] sm:$0xff]  ;;  %v306_v17 = vpack.c.bf16 %v45_v15, %v44_v14  ;;  %v47_v19 = vld [vmem:[#allocation2 + $0x48] sm:$0xff]  ;;  %v48_v21 = vld [vmem:[#allocation2 + $0x50] sm:$0xff]  ;;  %vm209_vm2 = vcmp.ge.s32.totalorder %v207_v34, 32  ;;  %vm210_vm3 = vcmp.lt.s32.totalorder %v207_v34, 40 }
  0x17   :  { %299 = vmatprep.subr.bf16.mxu0 %v360_v0  ;;  %v46_v18 = vld [vmem:[#allocation2 + $0x40] sm:$0xff]  ;;  %v49_v22 = vld [vmem:[#allocation2 + $0x58] sm:$0xff]  ;;  %v51_v25 = vld [vmem:[#allocation2 + $0x68] sm:$0xff]  ;;  %vm208_vm5 = vcmp.lt.s32.totalorder %v207_v34, 32 }
  0x18   :  { %322 = vmatpush3.bf16.msra.mxu1 %v321_v12  ;;  %v309_v20 = vpack.c.bf16 %v47_v19, %v46_v18  ;;  %v312_v23 = vpack.c.bf16 %v49_v22, %v48_v21  ;;  %v50_v24 = vld [vmem:[#allocation2 + $0x60] sm:$0xff]  ;;  %v52_v27 = vld [vmem:[#allocation2 + $0x70] sm:$0xff]  ;;  %v53_v28 = vld [vmem:[#allocation2 + $0x78] sm:$0xff] }
  0x19   :  { %v315_v26 = vpack.c.bf16 %v51_v25, %v50_v24  ;;  %v318_v29 = vpack.c.bf16 %v53_v28, %v52_v27  ;;  %v37_v30 = vld [vmem:[%s432_s1] sm:$0xff]  ;;  %vm420_vm4 = vmand %vm209_vm2, %vm210_vm3 }
  0x1a   :  { %301 = vmatpush3.bf16.msra.mxu0 %v300_v7  ;;  %v233_v36 = vld [vmem:[%s435_s4] ss:$0 sm:$0xff] }
  0x1b   :  { %302 = vmatprep.subr.bf16.mxu0 %v360_v0  ;;  %294 = vmatmul.mubr.msk.f32.vlgmr.msra.gmra.mrb[0].mxu1 %vm124_vm1, %v34_v16 }
  0x1e   :  { %304 = vmatpush3.bf16.msra.mxu0 %v303_v13 }
  0x1f   :  { %305 = vmatprep.subr.bf16.mxu0 %v360_v0 }
  0x22   :  { %307 = vmatpush3.bf16.msra.mxu0 %v306_v17 }
  0x23   :  { %308 = vmatprep.subr.bf16.mxu0 %v360_v0 }
  0x26   :  { %310 = vmatpush3.bf16.msra.mxu0 %v309_v20 }
  0x27   :  { %311 = vmatprep.subr.bf16.mxu0 %v360_v0 }
  0x2a   :  { %313 = vmatpush3.bf16.msra.mxu0 %v312_v23 }
  0x2b   :  { %314 = vmatprep.subr.bf16.mxu0 %v360_v0 }
  0x2e   :  { %316 = vmatpush3.bf16.msra.mxu0 %v315_v26 }
  0x2f   :  { %317 = vmatprep.subr.bf16.mxu0 %v360_v0 }
  0x32   :  { %319 = vmatpush3.bf16.msra.mxu0 %v318_v29 }
  0x35   :  { %287 = vmatmul.mubr.f32.vlgmr.msra.gmra.mrb[0].mxu0 %v37_v30 }
  0xee   :  { %v194_v31 = vpop.f32.mrb[0].mxu1 }
  0xef   :  { %v295_v32 = vpop.f32.mrb[1].mxu1 }
 0x108   :  { %v120_v35 = vpop.f32.mrb[0].mxu0 }
 0x109   :  { %v195_v37 = vadd.f32 %v194_v31, %v120_v35  ;;  %v288_v38 = vpop.f32.mrb[1].mxu0 }
 0x10b   :  { %v205_v40 = vadd.f32 %v233_v36, %v195_v37 }
 0x10d   :  { %v212_v41 = vsel %vm420_vm4, %v205_v40, -inf  ;;  %v224_v51 = vsel %vm208_vm5, %v205_v40, 0.0 }
 0x10e   :  { %213 = vmax.xlane.f32.xlu0 %v212_v41 }
 0x19b   :  { %v214_v42 = vpop.xlane.xlu0 %213 }
 0x19c   :  { %v215_v43 = vsub.f32 %v212_v41, %v214_v42  ;;  %v222_v48 = vsub.f32 %v205_v40, %v214_v42 }
 0x19e   :  { %v216_v44 = vmul.f32 1.442695, %v215_v43 }
 0x1a0   :  { %329 = vpow2.f32 %v216_v44 }
 0x1aa   :  { %v330_v45 = vpop.eup %329 }
 0x1ab   :  { %218 = vadd.xlane.f32.xlu0 %v330_v45 }
 0x238   :  { %v219_v46 = vpop.xlane.xlu0 %218 }
 0x239   :  { %331 = vlog2.f32 %v219_v46 }
 0x243   :  { %v332_v47 = vpop.eup %331 }
 0x244   :  { %v221_v49 = vmul.f32 0.6931472, %v332_v47 }
 0x246   :  { %v223_v50 = vsub.f32 %v222_v48, %v221_v49 }
 0x248   :  { %v225_v52 = vsel %vm420_vm4, %v223_v50, %v224_v51 }
 0x249   :  { %226 = vst [vmem:[%s436_s5] sm:$0xff] %v225_v52 }
 0x24a   :  { %231 = vsyncpa [#allocation3], 1 }

</bundles_post_ra>
